<compile_context>
chip_gen: v7x
topology: tpu7x:2x2x1
jax: 0.10.0
libtpu: 0.0.40
codegen_flags: <defaults>
</compile_context>

<pallas_src>
import functools

import jax
import jax.numpy as jnp
from jax.experimental import pallas as pl
from jax.experimental.pallas import tpu as pltpu


def _fsr_kernel(xf_ref, wa_ref, ba_ref, wct_ref, bc_ref, out_ref,
                *, H, W, Wp, L_outp):
    # xf_ref : (1, Cin, L_in)    zero-padded spatial plane, flattened on lanes
    # wa_ref : (Cin, Cin)        centre tap of conv_atten, laid out (in, out)
    # ba_ref : (1, Cin)          conv_atten bias
    # wct_ref: (9, Cout, Cin)    conv weight, per-tap (Cout, Cin), t = dh*3 + dw
    # bc_ref : (Cout, 1)         conv bias
    # out_ref: (1, Cout, L_outp) lane-dense output (width-padded + lane-padded)
    x_flat = xf_ref[0]                                   # (Cin, L_in), input dtype
    Cin = x_flat.shape[0]
    Cout = out_ref.shape[1]

    # ---- global average pool (all padding is zero, so a full-row sum is exact) ----
    pooled = (jnp.sum(x_flat, axis=1).astype(jnp.float32)
              * (1.0 / (H * W))).reshape(1, Cin)         # (1, Cin)

    # ---- attention: 3x3 conv on a 1x1 map == centre-tap matmul, then sigmoid ----
    atten = jax.nn.sigmoid(
        jnp.dot(pooled, wa_ref[...], preferred_element_type=jnp.float32)
        + ba_ref[...])                                   # (1, Cin)
    scale = 1.0 + atten                                  # fold x*(1+atten) into weights

    # ---- 3x3 conv, pad=1: 9 contiguous lane-shifted slices, 9 MXU matmuls ----
    acc = jnp.zeros((Cout, L_outp), jnp.float32)
    for dh in range(3):
        for dw in range(3):
            t = dh * 3 + dw
            off = dh * Wp + dw                           # static lane offset
            w_eff = (wct_ref[t] * scale).astype(x_flat.dtype)      # (Cout, Cin)
            acc = acc + jnp.dot(w_eff, x_flat[:, off:off + L_outp],
                                preferred_element_type=jnp.float32)
    acc = acc + bc_ref[...]                              # (Cout, 1) broadcast

    out_ref[0] = acc.astype(out_ref.dtype)


def feature_selection_reduction(x_nchw, wa_full, ba, wc, bc):
    """x_nchw: (N, Cin, H, W); wa_full: (Cin, Cin, 3, 3); ba: (Cin,);
    wc: (Cout, Cin, 3, 3); bc: (Cout,).  Returns (N, Cout, H, W)."""
    N, Cin, H, W = x_nchw.shape
    Cout = wc.shape[0]
    Hp, Wp = H + 2, W + 2

    # Flat (padded-width) output length, rounded up to a lane tile; flat input
    # length must cover the largest tap slice (offset 2*Wp + 2).
    L_out = H * Wp
    L_outp = pl.cdiv(L_out, 128) * 128
    L_in = pl.cdiv(max(Hp * Wp, L_outp + 2 * Wp + 2), 128) * 128

    # NCHW already puts channels on sublanes / spatial on lanes: no transpose.
    xpad = jnp.pad(x_nchw, ((0, 0), (0, 0), (1, 1), (1, 1)))
    x_flat = jnp.pad(xpad.reshape(N, Cin, Hp * Wp),
                     ((0, 0), (0, 0), (0, L_in - Hp * Wp)))

    # Centre tap of conv_atten (only tap that touches the 1x1 pooled map), (in, out).
    wa_mat = jnp.transpose(wa_full[:, :, 1, 1], (1, 0)).astype(jnp.float32)
    # Conv weight as 9 per-tap (Cout, Cin) matrices, t = dh*3 + dw.
    wct = jnp.transpose(wc, (2, 3, 0, 1)).reshape(9, Cout, Cin).astype(jnp.float32)
    ba2 = ba.reshape(1, Cin).astype(jnp.float32)
    bc2 = bc.reshape(Cout, 1).astype(jnp.float32)

    kernel = functools.partial(_fsr_kernel, H=H, W=W, Wp=Wp, L_outp=L_outp)

    out_flat = pl.pallas_call(
        kernel,
        out_shape=jax.ShapeDtypeStruct((N, Cout, L_outp), x_nchw.dtype),
        grid_spec=pltpu.PrefetchScalarGridSpec(
            num_scalar_prefetch=0,
            grid=(N,),
            in_specs=[
                pl.BlockSpec((1, Cin, L_in), lambda n: (n, 0, 0)),
                pl.BlockSpec((Cin, Cin), lambda n: (0, 0)),
                pl.BlockSpec((1, Cin), lambda n: (0, 0)),
                pl.BlockSpec((9, Cout, Cin), lambda n: (0, 0, 0)),
                pl.BlockSpec((Cout, 1), lambda n: (0, 0)),
            ],
            out_specs=pl.BlockSpec((1, Cout, L_outp), lambda n: (n, 0, 0)),
        ),
        compiler_params=pltpu.CompilerParams(
            dimension_semantics=("parallel",)),
    )(x_flat, wa_mat, ba2, wct, bc2)

    # Drop padded-width garbage columns (one small XLA copy on the output).
    out = out_flat[:, :, :H * Wp].reshape(N, Cout, H, Wp)[:, :, :, :W]
    return out


def _ref_forward(x, wa_full, ba, wc, bc):
    """Plain-JAX reference matching the PyTorch module exactly (NCHW)."""
    dn = ('NCHW', 'OIHW', 'NCHW')
    pooled = jnp.mean(x, axis=(2, 3), keepdims=True)
    atten = jax.nn.sigmoid(
        jax.lax.conv_general_dilated(pooled, wa_full, (1, 1), ((1, 1), (1, 1)),
                                     dimension_numbers=dn)
        + ba.reshape(1, -1, 1, 1))
    xx = x + x * atten
    return (jax.lax.conv_general_dilated(xx, wc, (1, 1), ((1, 1), (1, 1)),
                                         dimension_numbers=dn)
            + bc.reshape(1, -1, 1, 1))


if __name__ == "__main__":
    N, Cin, Cout, H, W = 2, 4, 8, 16, 16
    key = jax.random.PRNGKey(0)
    kx, k1, k2, k3, k4 = jax.random.split(key, 5)

    x = jax.random.normal(kx, (N, Cin, H, W), jnp.float32)
    # deterministic synthetic parameters (shapes from the module __init__)
    wa_full = jax.random.normal(k1, (Cin, Cin, 3, 3), jnp.float32) * 0.1  # conv_atten.weight
    ba = jax.random.normal(k2, (Cin,), jnp.float32) * 0.1                 # conv_atten.bias
    wc = jax.random.normal(k3, (Cout, Cin, 3, 3), jnp.float32) * 0.1      # conv.weight
    bc = jax.random.normal(k4, (Cout,), jnp.float32) * 0.1                # conv.bias

    out = feature_selection_reduction(x, wa_full, ba, wc, bc)
    out = jax.block_until_ready(out)

    ref = _ref_forward(x, wa_full, ba, wc, bc)
    assert out.shape == (N, Cout, H, W), out.shape
    assert jnp.allclose(out, ref, rtol=1e-2, atol=1e-2), \
        float(jnp.max(jnp.abs(out - ref)))
    print("KERNEL_OK")
</pallas_src>

<mosaic_0001>
module attributes {stable_mosaic.version = 11 : i64} {
  func.func @_fsr_kernel(%arg0: i32, %arg1: memref<1x4x512xf32, #tpu.memory_space<vmem>>, %arg2: memref<4x4xf32, #tpu.memory_space<vmem>>, %arg3: memref<1x4xf32, #tpu.memory_space<vmem>>, %arg4: memref<9x8x4xf32, #tpu.memory_space<vmem>>, %arg5: memref<8x1xf32, #tpu.memory_space<vmem>>, %arg6: memref<1x8x384xf32, #tpu.memory_space<vmem>>) attributes {dimension_semantics = [#tpu.dimension_semantics<parallel>], iteration_bounds = array<i64: 2>, scalar_prefetch = 0 : i64, scratch_operands = 0 : i64, tpu.core_type = #tpu.core_type<tc>, window_params = [{transform_indices = @transform_0, window_bounds = array<i64: 1, 4, 512>}, {pipeline_mode = #tpu.pipeline_mode<synchronous>, transform_indices = @transform_1, window_bounds = array<i64: 4, 4>}, {pipeline_mode = #tpu.pipeline_mode<synchronous>, transform_indices = @transform_2, window_bounds = array<i64: 1, 4>}, {pipeline_mode = #tpu.pipeline_mode<synchronous>, transform_indices = @transform_3, window_bounds = array<i64: 9, 8, 4>}, {pipeline_mode = #tpu.pipeline_mode<synchronous>, transform_indices = @transform_4, window_bounds = array<i64: 8, 1>}, {transform_indices = @transform_5, window_bounds = array<i64: 1, 8, 384>}]} {
    %c0 = arith.constant 0 : index
    %c0_0 = arith.constant 0 : index
    %c0_1 = arith.constant 0 : index
    %0 = vector.load %arg1[%c0, %c0_0, %c0_1] : memref<1x4x512xf32, #tpu.memory_space<vmem>>, vector<1x4x512xf32>
    %1 = vector.shape_cast %0 : vector<1x4x512xf32> to vector<4x512xf32>
    %cst = arith.constant dense<0.000000e+00> : vector<4xf32>
    %2 = vector.multi_reduction <add>, %1, %cst [1] : vector<4x512xf32> to vector<4xf32>
    %cst_2 = arith.constant 3.906250e-03 : f32
    %3 = vector.broadcast %cst_2 : f32 to vector<4xf32>
    %4 = arith.mulf %2, %3 : vector<4xf32>
    %5 = vector.shape_cast %4 : vector<4xf32> to vector<1x4xf32>
    %c0_3 = arith.constant 0 : index
    %c0_4 = arith.constant 0 : index
    %6 = vector.load %arg2[%c0_3, %c0_4] : memref<4x4xf32, #tpu.memory_space<vmem>>, vector<4x4xf32>
    %cst_5 = arith.constant dense<0.000000e+00> : vector<1x4xf32>
    %7 = tpu.matmul %5, %6, %cst_5 {dimension_numbers = #tpu.dot_dimension_numbers<[1], [0], [0], [1], [0, 0, 1, 1], [], []>} : vector<1x4xf32>, vector<4x4xf32>, vector<1x4xf32> -> vector<1x4xf32>
    %c0_6 = arith.constant 0 : index
    %c0_7 = arith.constant 0 : index
    %8 = vector.load %arg3[%c0_6, %c0_7] : memref<1x4xf32, #tpu.memory_space<vmem>>, vector<1x4xf32>
    %9 = arith.addf %7, %8 : vector<1x4xf32>
    %10 = arith.negf %9 : vector<1x4xf32>
    %11 = math.exp %10 : vector<1x4xf32>
    %cst_8 = arith.constant 1.000000e+00 : f32
    %12 = vector.broadcast %cst_8 : f32 to vector<1x4xf32>
    %13 = arith.addf %12, %11 : vector<1x4xf32>
    %14 = arith.divf %12, %13 : vector<1x4xf32>
    %cst_9 = arith.constant 1.000000e+00 : f32
    %15 = vector.broadcast %cst_9 : f32 to vector<1x4xf32>
    %16 = arith.addf %15, %14 : vector<1x4xf32>
    %cst_10 = arith.constant 0.000000e+00 : f32
    %17 = vector.broadcast %cst_10 : f32 to vector<8x384xf32>
    %c0_11 = arith.constant 0 : index
    %c0_12 = arith.constant 0 : index
    %c0_13 = arith.constant 0 : index
    %18 = vector.load %arg4[%c0_11, %c0_12, %c0_13] : memref<9x8x4xf32, #tpu.memory_space<vmem>>, vector<1x8x4xf32>
    %19 = vector.shape_cast %18 : vector<1x8x4xf32> to vector<8x4xf32>
    %20 = vector.broadcast %16 : vector<1x4xf32> to vector<8x4xf32>
    %21 = arith.mulf %19, %20 : vector<8x4xf32>
    %22 = vector.extract_strided_slice %1 {offsets = [0, 0], sizes = [4, 384], strides = [1, 1]} : vector<4x512xf32> to vector<4x384xf32>
    %cst_14 = arith.constant dense<0.000000e+00> : vector<8x384xf32>
    %23 = tpu.matmul %21, %22, %cst_14 {dimension_numbers = #tpu.dot_dimension_numbers<[1], [0], [0], [1], [0, 0, 1, 1], [], []>} : vector<8x4xf32>, vector<4x384xf32>, vector<8x384xf32> -> vector<8x384xf32>
    %24 = arith.addf %17, %23 : vector<8x384xf32>
    %c1 = arith.constant 1 : index
    %c0_15 = arith.constant 0 : index
    %c0_16 = arith.constant 0 : index
    %25 = vector.load %arg4[%c1, %c0_15, %c0_16] : memref<9x8x4xf32, #tpu.memory_space<vmem>>, vector<1x8x4xf32>
    %26 = vector.shape_cast %25 : vector<1x8x4xf32> to vector<8x4xf32>
    %27 = vector.broadcast %16 : vector<1x4xf32> to vector<8x4xf32>
    %28 = arith.mulf %26, %27 : vector<8x4xf32>
    %29 = vector.extract_strided_slice %1 {offsets = [0, 1], sizes = [4, 384], strides = [1, 1]} : vector<4x512xf32> to vector<4x384xf32>
    %cst_17 = arith.constant dense<0.000000e+00> : vector<8x384xf32>
    %30 = tpu.matmul %28, %29, %cst_17 {dimension_numbers = #tpu.dot_dimension_numbers<[1], [0], [0], [1], [0, 0, 1, 1], [], []>} : vector<8x4xf32>, vector<4x384xf32>, vector<8x384xf32> -> vector<8x384xf32>
    %31 = arith.addf %24, %30 : vector<8x384xf32>
    %c2 = arith.constant 2 : index
    %c0_18 = arith.constant 0 : index
    %c0_19 = arith.constant 0 : index
    %32 = vector.load %arg4[%c2, %c0_18, %c0_19] : memref<9x8x4xf32, #tpu.memory_space<vmem>>, vector<1x8x4xf32>
    %33 = vector.shape_cast %32 : vector<1x8x4xf32> to vector<8x4xf32>
    %34 = vector.broadcast %16 : vector<1x4xf32> to vector<8x4xf32>
    %35 = arith.mulf %33, %34 : vector<8x4xf32>
    %36 = vector.extract_strided_slice %1 {offsets = [0, 2], sizes = [4, 384], strides = [1, 1]} : vector<4x512xf32> to vector<4x384xf32>
    %cst_20 = arith.constant dense<0.000000e+00> : vector<8x384xf32>
    %37 = tpu.matmul %35, %36, %cst_20 {dimension_numbers = #tpu.dot_dimension_numbers<[1], [0], [0], [1], [0, 0, 1, 1], [], []>} : vector<8x4xf32>, vector<4x384xf32>, vector<8x384xf32> -> vector<8x384xf32>
    %38 = arith.addf %31, %37 : vector<8x384xf32>
    %c3 = arith.constant 3 : index
    %c0_21 = arith.constant 0 : index
    %c0_22 = arith.constant 0 : index
    %39 = vector.load %arg4[%c3, %c0_21, %c0_22] : memref<9x8x4xf32, #tpu.memory_space<vmem>>, vector<1x8x4xf32>
    %40 = vector.shape_cast %39 : vector<1x8x4xf32> to vector<8x4xf32>
    %41 = vector.broadcast %16 : vector<1x4xf32> to vector<8x4xf32>
    %42 = arith.mulf %40, %41 : vector<8x4xf32>
    %43 = vector.extract_strided_slice %1 {offsets = [0, 18], sizes = [4, 384], strides = [1, 1]} : vector<4x512xf32> to vector<4x384xf32>
    %cst_23 = arith.constant dense<0.000000e+00> : vector<8x384xf32>
    %44 = tpu.matmul %42, %43, %cst_23 {dimension_numbers = #tpu.dot_dimension_numbers<[1], [0], [0], [1], [0, 0, 1, 1], [], []>} : vector<8x4xf32>, vector<4x384xf32>, vector<8x384xf32> -> vector<8x384xf32>
    %45 = arith.addf %38, %44 : vector<8x384xf32>
    %c4 = arith.constant 4 : index
    %c0_24 = arith.constant 0 : index
    %c0_25 = arith.constant 0 : index
    %46 = vector.load %arg4[%c4, %c0_24, %c0_25] : memref<9x8x4xf32, #tpu.memory_space<vmem>>, vector<1x8x4xf32>
    %47 = vector.shape_cast %46 : vector<1x8x4xf32> to vector<8x4xf32>
    %48 = vector.broadcast %16 : vector<1x4xf32> to vector<8x4xf32>
    %49 = arith.mulf %47, %48 : vector<8x4xf32>
    %50 = vector.extract_strided_slice %1 {offsets = [0, 19], sizes = [4, 384], strides = [1, 1]} : vector<4x512xf32> to vector<4x384xf32>
    %cst_26 = arith.constant dense<0.000000e+00> : vector<8x384xf32>
    %51 = tpu.matmul %49, %50, %cst_26 {dimension_numbers = #tpu.dot_dimension_numbers<[1], [0], [0], [1], [0, 0, 1, 1], [], []>} : vector<8x4xf32>, vector<4x384xf32>, vector<8x384xf32> -> vector<8x384xf32>
    %52 = arith.addf %45, %51 : vector<8x384xf32>
    %c5 = arith.constant 5 : index
    %c0_27 = arith.constant 0 : index
    %c0_28 = arith.constant 0 : index
    %53 = vector.load %arg4[%c5, %c0_27, %c0_28] : memref<9x8x4xf32, #tpu.memory_space<vmem>>, vector<1x8x4xf32>
    %54 = vector.shape_cast %53 : vector<1x8x4xf32> to vector<8x4xf32>
    %55 = vector.broadcast %16 : vector<1x4xf32> to vector<8x4xf32>
    %56 = arith.mulf %54, %55 : vector<8x4xf32>
    %57 = vector.extract_strided_slice %1 {offsets = [0, 20], sizes = [4, 384], strides = [1, 1]} : vector<4x512xf32> to vector<4x384xf32>
    %cst_29 = arith.constant dense<0.000000e+00> : vector<8x384xf32>
    %58 = tpu.matmul %56, %57, %cst_29 {dimension_numbers = #tpu.dot_dimension_numbers<[1], [0], [0], [1], [0, 0, 1, 1], [], []>} : vector<8x4xf32>, vector<4x384xf32>, vector<8x384xf32> -> vector<8x384xf32>
    %59 = arith.addf %52, %58 : vector<8x384xf32>
    %c6 = arith.constant 6 : index
    %c0_30 = arith.constant 0 : index
    %c0_31 = arith.constant 0 : index
    %60 = vector.load %arg4[%c6, %c0_30, %c0_31] : memref<9x8x4xf32, #tpu.memory_space<vmem>>, vector<1x8x4xf32>
    %61 = vector.shape_cast %60 : vector<1x8x4xf32> to vector<8x4xf32>
    %62 = vector.broadcast %16 : vector<1x4xf32> to vector<8x4xf32>
    %63 = arith.mulf %61, %62 : vector<8x4xf32>
    %64 = vector.extract_strided_slice %1 {offsets = [0, 36], sizes = [4, 384], strides = [1, 1]} : vector<4x512xf32> to vector<4x384xf32>
    %cst_32 = arith.constant dense<0.000000e+00> : vector<8x384xf32>
    %65 = tpu.matmul %63, %64, %cst_32 {dimension_numbers = #tpu.dot_dimension_numbers<[1], [0], [0], [1], [0, 0, 1, 1], [], []>} : vector<8x4xf32>, vector<4x384xf32>, vector<8x384xf32> -> vector<8x384xf32>
    %66 = arith.addf %59, %65 : vector<8x384xf32>
    %c7 = arith.constant 7 : index
    %c0_33 = arith.constant 0 : index
    %c0_34 = arith.constant 0 : index
    %67 = vector.load %arg4[%c7, %c0_33, %c0_34] : memref<9x8x4xf32, #tpu.memory_space<vmem>>, vector<1x8x4xf32>
    %68 = vector.shape_cast %67 : vector<1x8x4xf32> to vector<8x4xf32>
    %69 = vector.broadcast %16 : vector<1x4xf32> to vector<8x4xf32>
    %70 = arith.mulf %68, %69 : vector<8x4xf32>
    %71 = vector.extract_strided_slice %1 {offsets = [0, 37], sizes = [4, 384], strides = [1, 1]} : vector<4x512xf32> to vector<4x384xf32>
    %cst_35 = arith.constant dense<0.000000e+00> : vector<8x384xf32>
    %72 = tpu.matmul %70, %71, %cst_35 {dimension_numbers = #tpu.dot_dimension_numbers<[1], [0], [0], [1], [0, 0, 1, 1], [], []>} : vector<8x4xf32>, vector<4x384xf32>, vector<8x384xf32> -> vector<8x384xf32>
    %73 = arith.addf %66, %72 : vector<8x384xf32>
    %c8 = arith.constant 8 : index
    %c0_36 = arith.constant 0 : index
    %c0_37 = arith.constant 0 : index
    %74 = vector.load %arg4[%c8, %c0_36, %c0_37] : memref<9x8x4xf32, #tpu.memory_space<vmem>>, vector<1x8x4xf32>
    %75 = vector.shape_cast %74 : vector<1x8x4xf32> to vector<8x4xf32>
    %76 = vector.broadcast %16 : vector<1x4xf32> to vector<8x4xf32>
    %77 = arith.mulf %75, %76 : vector<8x4xf32>
    %78 = vector.extract_strided_slice %1 {offsets = [0, 38], sizes = [4, 384], strides = [1, 1]} : vector<4x512xf32> to vector<4x384xf32>
    %cst_38 = arith.constant dense<0.000000e+00> : vector<8x384xf32>
    %79 = tpu.matmul %77, %78, %cst_38 {dimension_numbers = #tpu.dot_dimension_numbers<[1], [0], [0], [1], [0, 0, 1, 1], [], []>} : vector<8x4xf32>, vector<4x384xf32>, vector<8x384xf32> -> vector<8x384xf32>
    %80 = arith.addf %73, %79 : vector<8x384xf32>
    %c0_39 = arith.constant 0 : index
    %c0_40 = arith.constant 0 : index
    %81 = vector.load %arg5[%c0_39, %c0_40] : memref<8x1xf32, #tpu.memory_space<vmem>>, vector<8x1xf32>
    %82 = vector.broadcast %81 : vector<8x1xf32> to vector<8x384xf32>
    %83 = arith.addf %80, %82 : vector<8x384xf32>
    %c0_41 = arith.constant 0 : index
    %c0_42 = arith.constant 0 : index
    %c0_43 = arith.constant 0 : index
    %84 = vector.load %arg6[%c0_41, %c0_42, %c0_43] : memref<1x8x384xf32, #tpu.memory_space<vmem>>, vector<1x8x384xf32>
    %85 = vector.shape_cast %84 : vector<1x8x384xf32> to vector<8x384xf32>
    %86 = vector.shape_cast %83 : vector<8x384xf32> to vector<1x8x384xf32>
    tpu.vector_store %arg6[%c0_41, %c0_42, %c0_43], %86 {strides = array<i32>} : memref<1x8x384xf32, #tpu.memory_space<vmem>>, vector<1x8x384xf32>,
    return
  }
  func.func @transform_0(%arg0: i32) -> (i32, i32, i32) {
    %c0_i32 = arith.constant 0 : i32
    %c0_i32_0 = arith.constant 0 : i32
    %c0_i32_1 = arith.constant 0 : i32
    return %arg0, %c0_i32, %c0_i32_0 : i32, i32, i32
  }
  func.func @transform_1(%arg0: i32) -> (i32, i32) {
    %c0_i32 = arith.constant 0 : i32
    %c0_i32_0 = arith.constant 0 : i32
    %c0_i32_1 = arith.constant 0 : i32
    return %c0_i32, %c0_i32_0 : i32, i32
  }
  func.func @transform_2(%arg0: i32) -> (i32, i32) {
    %c0_i32 = arith.constant 0 : i32
    %c0_i32_0 = arith.constant 0 : i32
    %c0_i32_1 = arith.constant 0 : i32
    return %c0_i32, %c0_i32_0 : i32, i32
  }
  func.func @transform_3(%arg0: i32) -> (i32, i32, i32) {
    %c0_i32 = arith.constant 0 : i32
    %c0_i32_0 = arith.constant 0 : i32
    %c0_i32_1 = arith.constant 0 : i32
    %c0_i32_2 = arith.constant 0 : i32
    return %c0_i32, %c0_i32_0, %c0_i32_1 : i32, i32, i32
  }
  func.func @transform_4(%arg0: i32) -> (i32, i32) {
    %c0_i32 = arith.constant 0 : i32
    %c0_i32_0 = arith.constant 0 : i32
    %c0_i32_1 = arith.constant 0 : i32
    return %c0_i32, %c0_i32_0 : i32, i32
  }
  func.func @transform_5(%arg0: i32) -> (i32, i32, i32) {
    %c0_i32 = arith.constant 0 : i32
    %c0_i32_0 = arith.constant 0 : i32
    %c0_i32_1 = arith.constant 0 : i32
    return %arg0, %c0_i32, %c0_i32_0 : i32, i32, i32
  }
}

</mosaic_0001>

<bundles_post_ra>
// kernel: tpu_custom_call.1
= control target key start
LH: loop header
LB: loop body
LE: loop exit
PB: predicated region body
PF: predicated region fallthrough
CT: control target
= control target key end

     0   :  { %10 = vsyncpa [#allocation3], 0  ;;  %s2583_s0 = inlined_call_operand.vmem [shape: f32[2,4,512], index: 0, kind: input, shape index: {}]   ;;  %s2584_s1 = inlined_call_operand.vmem [shape: f32[4,4], index: 1, kind: input, shape index: {}]   ;;  %s2585_s2 = inlined_call_operand.vmem [shape: f32[1,4], index: 2, kind: input, shape index: {}]   ;;  %s2586_s3 = inlined_call_operand.vmem [shape: f32[9,8,4], index: 3, kind: input, shape index: {}]   ;;  %s2587_s4 = inlined_call_operand.vmem [shape: f32[8,1], index: 4, kind: input, shape index: {}]   ;;  %s2588_s5 = inlined_call_operand.hbm [shape: f32[2,8,384], index: 5, kind: output, shape index: {}]  }
   0x1   :  { %12 = vsyncpa [#allocation3 + $0x1], 0  ;;  %s2234_s18 = smov 0   ;;  %s2236_s19 = smov 0  }
   0x2   :  { %s2238_s20 = smov 0   ;;  %s2240_s21 = smov 0  }
   0x3 LB: > { %s2255_s22 = sadd.s32 4294967295, %s2190_s21   ;;  %s1917_s23 = sadd.s32 4294967294, %s2190_s21   ;;  %s2190_s21 = sphi %s2240_s21, %s2594_s21   ;;  %s2186_s20 = sphi %s2238_s20, %s2593_s20   ;;  %s2182_s19 = sphi %s2236_s19, %s2592_s19   ;;  %s2178_s18 = sphi %s2234_s18, %s2591_s18  }
   0x4   : > { %s2259_s24 = sadd.s32 1, %s2190_s21   ;;  %s135_s25 = sadd.s32 1, %s2186_s20 }
   0x5   : > { %s132_s26 = ssub.s32 %s2190_s21, %s2259_s24  ;;  %p145_p0 = scmp.ne.s32.totalorder %s2186_s20, %s2182_s19 }
   0x6   : > { %p133_p1 = scmp.eq.s32.totalorder %s132_s26, 0  ;;  %p146_p2 = scmp.eq.s32.totalorder %s2255_s22, 1 }
   0x7   : > { %p151_p3 = scmp.ne.s32.totalorder %s2182_s19, %s2178_s18  ;;  %p152_p4 = scmp.eq.s32.totalorder %s1917_s23, 1 }
   0x8   : > { %s2270_s27 = scalar_select %p133_p1, %s2186_s20, %s135_s25  }
   0x9   : > { %p2272_p5 = por %p146_p2, %p145_p0  ;;  %p2276_p6 = por %p152_p4, %p151_p3 }
   0xa   : > { %p1920_p7 = scmp.ge.s32.totalorder %s2190_s21, 1  ;;  %p190_p8 = scmp.lt.s32.totalorder %s2190_s21, 3 }
   0xc   : > { %p191_p9 = pnand %p1920_p7, %p190_p8 }
   0xd   : > { %p218_p10 = scmp.lt.s32.totalorder (!%p191_p9), %s2255_s22, 1  ;;  %vm231_vm0 = vcmask (!%p191_p9), 1043456   ;;  %v2192_v11 = vmov (!%p191_p9), 0.0   ;;  %v242_v12 = vld [vmem:[%s2584_s1] sm:$0xf] (!%p191_p9)  ;;  %vm2193_vm1 = vmmov (!%p191_p9), 0   ;;  %v245_v13 = vlaneseq (!%p191_p9) }
   0xe   : > { %194 = sbr.rel (%p191_p9) target bundleno = 720 (0x2d0), region = 40  ;;  %2003 = vmatprep.subr.mxu0 (!%p191_p9), %v2192_v11  ;;  %428 = vmatprep.mubr.f32.mxu1 (!%p191_p9), %v2192_v11  ;;  %s2194_s12 = smov (!%p191_p9), 127   ;;  %vm251_vm2 = vcmask (!%p191_p9), 31744   ;;  %vm351_vm3 = vcmask (!%p191_p9), 1039360   ;;  %vm666_vm4 = vcmask (!%p191_p9), 1031168   ;;  %vm834_vm5 = vcmask (!%p191_p9), 900096  }
   0xf   : > { %2004 = vmatpush3.msk.msra.mxu0 (!%p191_p9), %vm231_vm0, %v242_v12  ;;  %2005 = vmatprep.mubr.msk.f32.mxu0 (!%p191_p9), %vm2193_vm1, %v2192_v11  ;;  %s2195_s13 = smov (!%p191_p9), 110   ;;  %s2196_s14 = smov (!%p191_p9), 126   ;;  %v246_v14 = vand.u32 (!%p191_p9), 127, %v245_v13  ;;  %v248_v15 = vshrl.u32 (!%p191_p9), %v245_v13, 7  ;;  %v1831_v35 = vld [vmem:[%s2587_s4] sm:$0xff] (!%p191_p9)  ;;  %v2202_v36 = vmov (!%p191_p9), 0  }
  0x10   : > { %2008 = vmatprep.subr.mxu0 (!%p191_p9), %v2192_v11  ;;  %s2197_s15 = smov (!%p191_p9), 109   ;;  %s2198_s16 = smov (!%p191_p9), 108   ;;  %2121 = vset.pattern.permute.xlu0 (!%p191_p9), %v2202_v36  ;;  %v243_v38 = vld [vmem:[%s2585_s2] sm:$0x1] (!%p191_p9)  ;;  %v1926_v59 = vld [vmem:[%s2586_s3 + $0x8] sm:$0xff] (!%p191_p9)  ;;  %vm1002_vm6 = vcmask (!%p191_p9), 891904  }
  0x11   : > { %s2199_s17 = smov (!%p191_p9), 92   ;;  %s2200_s23 = smov (!%p191_p9), 91   ;;  %v249_v16 = vsub.s32 (!%p191_p9), %v246_v14, %v248_v15  ;;  %v337_v54 = vsub.s32 (!%p191_p9), 0, %v248_v15  ;;  %v334_v62 = vld [vmem:[%s2586_s3] sm:$0xff] (!%p191_p9)  ;;  %vm1170_vm7 = vcmask (!%p191_p9), 883712   ;;  %vm1338_vm8 = vcmask (!%p191_p9), 752640  }
  0x12   : > { %s2201_s25 = smov (!%p191_p9), 90   ;;  %v1949_v12 = vld [vmem:[%s2586_s3 + $0x20] sm:$0xff] (!%p191_p9)  ;;  %vm1506_vm9 = vcmask (!%p191_p9), 744448   ;;  %vm1674_vm10 = vcmask (!%p191_p9), 736256   ;;  %s215_s10 = sand.u32 (!%p191_p9), 1, %s2182_s19  }
  0x13   : > { %s2069_s11 = smul.u32 (!%p191_p9), 24, %s215_s10 }
  0x15   : > { %s219_s30 = scalar_select %p218_p10, %s2255_s22, 1 }
  0x17   : > { %s1982_s6 = sshll.u32 %s219_s30, 4 }
  0x18   : > { %s222_s9 = scalar_lea.vmem %s2583_s0, %s1982_s6 }
  0x19   : > { %v2287_v0 = vld [vmem:[%s222_s9] sm:$0xff]  ;;  %v2289_v1 = vld [vmem:[%s222_s9 + $0x8] sm:$0xff] }
  0x1a   : > { %v2293_v2 = vcombine.high %v2287_v0, %v2287_v0  ;;  %v228_v3 = vcombine.high %v2289_v1, %v2289_v1  ;;  %v232_v4 = vsel %vm231_vm0, %v2287_v0, 0.0  ;;  %v235_v6 = vsel %vm231_vm0, %v2289_v1, 0.0  ;;  %347 = vrot.lane.b32.xlu1 %v2289_v1, %s2194_s12 }
  0x1c   : > { %v233_v5 = vsel %vm231_vm0, %v2293_v2, 0.0  ;;  %v237_v8 = vsel %vm231_vm0, %v228_v3, 0.0 }
  0x1d   : > { %v234_v7 = vadd.f32 %v233_v5, %v232_v4 }
  0x1e   : > { %343 = vrot.lane.b32.xlu1 %v2287_v0, %s2194_s12 }
  0x1f   : > { %v236_v9 = vadd.f32 %v235_v6, %v234_v7 }
  0x21   : > { %v238_v10 = vadd.f32 %v237_v8, %v236_v9  ;;  %v1943_v8 = vld [vmem:[%s2586_s3 + $0x18] sm:$0xff] }
  0x22   : > { %660 = vrot.lane.b32.xlu1 %v2293_v2, %s2196_s14 }
  0x23   : > { %239 = vadd.xlane.f32.xlu0 %v238_v10 }
  0x26   : > { %662 = vrot.lane.b32.xlu1 %v2289_v1, %s2196_s14 }
  0x2a   : > { %658 = vrot.lane.b32.xlu1 %v2287_v0, %s2196_s14 }
  0x2e   : > { %828 = vrot.lane.b32.xlu1 %v2293_v2, %s2195_s13 }
  0x32   : > { %830 = vrot.lane.b32.xlu1 %v2289_v1, %s2195_s13 }
  0x36   : > { %349 = vrot.lane.b32.xlu1 %v228_v3, %s2194_s12 }
  0x39   : > { %345 = vrot.lane.b32.xlu0 %v2293_v2, %s2194_s12  ;;  %s217_s12 = scalar_lea.vmem [#allocation2], %s2069_s11 }
  0x3a   : > { %998 = vrot.lane.b32.xlu1 %v2289_v1, %s2197_s15 }
  0x3d   : > { %826 = vrot.lane.b32.xlu0 %v2287_v0, %s2195_s13 }
  0x3e   : > { %664 = vrot.lane.b32.xlu1 %v228_v3, %s2196_s14  ;;  %s1858_s14 = sshll.u32 %s217_s12, 4  ;;  %s2543_s14 = int_to_ptr.vmem [resolvable:$true] %s1858_s14 }
  0x41   : > { %996 = vrot.lane.b32.xlu0 %v2293_v2, %s2197_s15 }
  0x42   : > { %1166 = vrot.lane.b32.xlu1 %v2289_v1, %s2198_s16 }
  0x45   : > { %994 = vrot.lane.b32.xlu0 %v2287_v0, %s2197_s15 }
  0x46   : > { %832 = vrot.lane.b32.xlu1 %v228_v3, %s2195_s13  ;;  %s2070_s13 = smul.u32 384, %s2255_s22  ;;  %s2203_s22 = smov [#allocation2]  }
  0x47   : > { %s2132_s26 = sshll.u32 %s2203_s22, 4  ;;  %s2133_s26 = int_to_ptr.vmem [resolvable:$false] %s2132_s26 }
  0x48   : > { %s2134_s30 = scalar_lea.vmem %s2133_s26, 768  ;;  %p2135_p0 = scmp.lt.s32.totalorder %s2543_s14, %s2133_s26 }
  0x49   : > { %1164 = vrot.lane.b32.xlu0 %v2293_v2, %s2198_s16 }
  0x4a   : > { %1332 = vrot.lane.b32.xlu1 %v2293_v2, %s2199_s17 }
  0x4d   : > { %1162 = vrot.lane.b32.xlu0 %v2287_v0, %s2198_s16 }
  0x4e   : > { %1330 = vrot.lane.b32.xlu1 %v2287_v0, %s2199_s17 }
  0x51   : > { %1000 = vrot.lane.b32.xlu0 %v228_v3, %s2197_s15 }
  0x52   : > { %1336 = vrot.lane.b32.xlu1 %v228_v3, %s2199_s17 }
  0x55   : > { %1334 = vrot.lane.b32.xlu0 %v2289_v1, %s2199_s17  ;;  %s2541_s17 = scalar_lea.hbm %s2588_s5, %s2070_s13 }
  0x56   : > { %1502 = vrot.lane.b32.xlu1 %v2289_v1, %s2200_s23 }
  0x59   : > { %1168 = vrot.lane.b32.xlu0 %v228_v3, %s2198_s16 }
  0x5a   : > { %1504 = vrot.lane.b32.xlu1 %v228_v3, %s2200_s23 }
  0x5d   : > { %1500 = vrot.lane.b32.xlu0 %v2293_v2, %s2200_s23 }
  0x5e   : > { %1670 = vrot.lane.b32.xlu1 %v2289_v1, %s2201_s25 }
  0x61   : > { %1498 = vrot.lane.b32.xlu0 %v2287_v0, %s2200_s23  ;;  %s1844_s23 = scalar_lea.sflag [#allocation3], %s215_s10 }
  0x62   : > { %1666 = vrot.lane.b32.xlu1 %v2287_v0, %s2201_s25 }
  0x65   : > { %1668 = vrot.lane.b32.xlu0 %v2293_v2, %s2201_s25 }
  0x69   : > { %1672 = vrot.lane.b32.xlu0 %v228_v3, %s2201_s25  ;;  %s2128_s25 = scalar_lea.vmem %s2543_s14, 384 }
  0x6a   : > { %p2129_p11 = scmp.ne.s32.totalorder %s2543_s14, %s2128_s25  ;;  %p2136_p1 = scmp.lt.s32.totalorder %s2134_s30, %s2128_s25 }
  0x6c   : > { %p2130_p12 = pnand %p2129_p11, %p2272_p5  ;;  %p2137_p2 = por %p2136_p1, %p2135_p0 }
  0x6d   : > { %1834 = vperm.xlu0 %2121, %v1831_v35  }
  0x6e   : > { %p2131_p13 = pneg %p2130_p12 }
  0x70   : > { %p2138_p3 = pnand %p2137_p2, %p2131_p13 }
  0x8c   : > { %v348_v20 = vpop.permute.xlu1 %347 }
  0x90   : > { %v344_v21 = vpop.permute.xlu1 %343 }
  0x94   : > { %v661_v22 = vpop.permute.xlu1 %660 }
  0x98   : > { %v663_v23 = vpop.permute.xlu1 %662 }
  0x99   : > { %v668_v32 = vsel %vm666_vm4, %v661_v22, %v663_v23 }
  0x9c   : > { %v659_v24 = vpop.permute.xlu1 %658 }
  0x9d   : > { %v667_v33 = vsel %vm666_vm4, %v659_v24, %v661_v22  ;;  %v1961_v24 = vld [vmem:[%s2586_s3 + $0x30] sm:$0xff] }
  0xa0   : > { %v2340_v25 = vpop.permute.xlu1 %828 }
  0xa4   : > { %v2342_v26 = vpop.permute.xlu1 %830 }
  0xa5   : > { %v836_v34 = vsel %vm834_vm5, %v2340_v25, %v2342_v26 }
  0xa8   : > { %v350_v28 = vpop.permute.xlu1 %349 }
  0xa9   : > { %v354_v29 = vsel %vm351_vm3, %v348_v20, %v350_v28  ;;  %v1967_v28 = vld [vmem:[%s2586_s3 + $0x38] sm:$0xff] }
  0xac   : > { %v2365_v44 = vpop.permute.xlu1 %998 }
  0xb0   : > { %v240_v17 = vpop.xlane.xlu0 %239  ;;  %v665_v46 = vpop.permute.xlu1 %664 }
  0xb1   : > { %v241_v18 = vmul.f32 0.00390625, %v240_v17  ;;  %v669_v3 = vsel %vm666_vm4, %v663_v23, %v665_v46 }
  0xb3   : > { %v250_v19 = vrot.slane %v241_v18, %v249_v16  ;;  %v1955_v18 = vld [vmem:[%s2586_s3 + $0x28] sm:$0xff] }
  0xb4   : > { %v346_v27 = vpop.permute.xlu0 %345  ;;  %v2371_v50 = vpop.permute.xlu1 %1166 }
  0xb5   : > { %2006 = vmatmul.mubr.msk.f32.vlgmr.msra.gmra.mrb[0].mxu0 %vm251_vm2, %v250_v19  ;;  %v353_v30 = vsel %vm351_vm3, %v346_v27, %v348_v20  ;;  %v352_v31 = vsel %vm351_vm3, %v344_v21, %v346_v27 }
  0xb6   : > { %2010 = vmatprep.mubr.msk.f32.mxu0 %vm2193_vm1, %v2192_v11  ;;  %1927 = vmatprep.subr.msk.mxu1 %vm231_vm0, %v353_v30 }
  0xb7   : > { %2009 = vmatpush3.msk.msra.mxu0 %vm231_vm0, %v354_v29  ;;  %1928 = vmatpush1.msk.msra.mxu1 %vm231_vm0, %v352_v31 }
  0xb8   : > { %2013 = vmatprep.subr.mxu0 %v2192_v11  ;;  %1932 = vmatprep.subr.msk.mxu1 %vm231_vm0, %v2293_v2  ;;  %v2358_v37 = vpop.permute.xlu0 %826  ;;  %v833_v52 = vpop.permute.xlu1 %832 }
  0xb9   : > { %v837_v6 = vsel %vm834_vm5, %v2342_v26, %v833_v52  ;;  %v835_v19 = vsel %vm834_vm5, %v2358_v37, %v2340_v25 }
  0xbc   : > { %v2363_v39 = vpop.permute.xlu0 %996  ;;  %v2375_v56 = vpop.permute.xlu1 %1332 }
  0xbd   : > { %v1004_v17 = vsel %vm1002_vm6, %v2363_v39, %v2365_v44 }
  0xc0   : > { %v2367_v45 = vpop.permute.xlu0 %994  ;;  %v2388_v63 = vpop.permute.xlu1 %1330 }
  0xc1   : > { %v1003_v31 = vsel %vm1002_vm6, %v2367_v45, %v2363_v39 }
  0xc4   : > { %v2369_v47 = vpop.permute.xlu0 %1164 }
  0xc5   : > { %v1172_v27 = vsel %vm1170_vm7, %v2369_v47, %v2371_v50 }
  0xc8   : > { %v2373_v51 = vpop.permute.xlu0 %1162 }
  0xc9   : > { %v1171_v37 = vsel %vm1170_vm7, %v2373_v51, %v2369_v47 }
  0xcc   : > { %v1001_v53 = vpop.permute.xlu0 %1000 }
  0xcd   : > { %v1005_v9 = vsel %vm1002_vm6, %v2365_v44, %v1001_v53 }
  0xd0   : > { %v2377_v57 = vpop.permute.xlu0 %1334 }
  0xd1   : > { %v1340_v36 = vsel %vm1338_vm8, %v2375_v56, %v2377_v57 }
  0xd4   : > { %v1169_v2 = vpop.permute.xlu0 %1168 }
  0xd5   : > { %v1173_v15 = vsel %vm1170_vm7, %v2371_v50, %v1169_v2 }
  0xd8   : > { %v2410_v5 = vpop.permute.xlu0 %1500 }
  0xdc   : > { %v2434_v14 = vpop.permute.xlu0 %1498 }
  0xe0   : > { %v1669_v21 = vpop.permute.xlu0 %1668 }
  0xe4   : > { %v1673_v30 = vpop.permute.xlu0 %1672 }
 0x188   : > { %v323_v40 = vpop.f32.mrb[0].mxu0 }
 0x189   : > { %v324_v41 = vadd.f32 %v323_v40, %v243_v38  ;;  %v2007_v42 = vpop.f32.mrb[1].mxu0  ;;  %v1339_v38 = vsel %vm1338_vm8, %v2388_v63, %v2375_v56  ;;  %v1507_v40 = vsel %vm1506_vm9, %v2434_v14, %v2410_v5 }
 0x18b   : > { %v1925_v43 = vmul.f32 -1.442695, %v324_v41 }
 0x18d   : > { %2124 = vpow2.f32 %v1925_v43 }
 0x197   : > { %v2125_v48 = vpop.eup %2124 }
 0x198   : > { %v330_v49 = vadd.f32 1.0, %v2125_v48 }
 0x19a   : > { %2126 = vrcp.f32 %v330_v49 }
 0x1a4   : > { %v2127_v55 = vpop.eup %2126 }
 0x1a5   : > { %v333_v58 = vadd.f32 1.0, %v2127_v55 }
 0x1a7   : > { %v2382_v60 = vrot.slane %v333_v58, %v337_v54 }
 0x1a9   : > { %v342_v61 = vmul.f32 %v1926_v59, %v2382_v60  ;;  %v339_v4 = vmul.f32 %v2382_v60, %v334_v62  ;;  %v825_v10 = vmul.f32 %v1943_v8, %v2382_v60  ;;  %v993_v16 = vmul.f32 %v1949_v12, %v2382_v60 }
 0x1aa   : > { %v1161_v23 = vmul.f32 %v1955_v18, %v2382_v60  ;;  %v1329_v25 = vmul.f32 %v1961_v24, %v2382_v60 }
 0x1ab   : > { %1929 = vmatmul.mubr.msk.f32.vlgmr.msra.gmra.mrb[0].mxu1 %vm251_vm2, %v342_v61  ;;  %2011 = vmatmul.mubr.msk.f32.vlgmr.msra.gmra.mrb[2].mxu0 %vm251_vm2, %v342_v61 }
 0x1ac   : > { %1933 = vmatpush1.msk.msra.mxu1 %vm231_vm0, %v2287_v0  ;;  %2014 = vmatpush3.msk.msra.mxu0 %vm231_vm0, %v2289_v1  ;;  %v1937_v0 = vld [vmem:[%s2586_s3 + $0x10] sm:$0xff]  ;;  %v1337_v1 = vpop.permute.xlu1 %1336 }
 0x1ad   : > { %1938 = vmatprep.subr.msk.mxu1 %vm231_vm0, %v668_v32  ;;  %2015 = vmatprep.mubr.msk.f32.mxu0 %vm2193_vm1, %v2192_v11  ;;  %v657_v7 = vmul.f32 %v1937_v0, %v2382_v60  ;;  %v1341_v22 = vsel %vm1338_vm8, %v2377_v57, %v1337_v1  ;;  %v1497_v32 = vmul.f32 %v1967_v28, %v2382_v60  ;;  %v1835_v0 = vpop.permute.xlu0 %1834 }
 0x1ae   : > { %2018 = vmatprep.subr.mxu0 %v2192_v11  ;;  %578 = vmatprep.mubr.f32.mxu1 %v2192_v11 }
 0x1af   : > { %2016 = vmatmul.mubr.msk.f32.vlgmr.msra.gmra.mrb[4].mxu0 %vm251_vm2, %v339_v4 }
 0x1b0   : > { %2019 = vmatpush3.msk.msra.mxu0 %vm231_vm0, %v669_v3  ;;  %2020 = vmatprep.mubr.msk.f32.mxu0 %vm2193_vm1, %v2192_v11  ;;  %v1503_v13 = vpop.permute.xlu1 %1502 }
 0x1b1   : > { %2023 = vmatprep.subr.mxu0 %v2192_v11  ;;  %v1508_v39 = vsel %vm1506_vm9, %v2410_v5, %v1503_v13 }
 0x1b3   : > { %1934 = vmatmul.mubr.msk.f32.vlgmr.msra.gmra.mrb[0].mxu1 %vm251_vm2, %v339_v4  ;;  %2021 = vmatmul.mubr.msk.f32.vlgmr.msra.gmra.mrb[6].mxu0 %vm251_vm2, %v657_v7 }
 0x1b4   : > { %1939 = vmatpush1.msk.msra.mxu1 %vm231_vm0, %v667_v33  ;;  %2024 = vmatpush3.msk.msra.mxu0 %vm231_vm0, %v837_v6  ;;  %v1505_v20 = vpop.permute.xlu1 %1504 }
 0x1b5   : > { %1944 = vmatprep.subr.msk.mxu1 %vm231_vm0, %v836_v34  ;;  %2025 = vmatprep.mubr.msk.f32.mxu0 %vm2193_vm1, %v2192_v11  ;;  %v1509_v26 = vsel %vm1506_vm9, %v1503_v13, %v1505_v20  ;;  %v1973_v34 = vld [vmem:[%s2586_s3 + $0x40] sm:$0xff] }
 0x1b6   : > { %2028 = vmatprep.subr.mxu0 %v2192_v11  ;;  %743 = vmatprep.mubr.f32.mxu1 %v2192_v11  ;;  %v1665_v35 = vmul.f32 %v1973_v34, %v2382_v60 }
 0x1b7   : > { %2026 = vmatmul.mubr.msk.f32.vlgmr.msra.gmra.mrb[8].mxu0 %vm251_vm2, %v825_v10 }
 0x1b8   : > { %2029 = vmatpush3.msk.msra.mxu0 %vm231_vm0, %v1005_v9  ;;  %2030 = vmatprep.mubr.msk.f32.mxu0 %vm2193_vm1, %v2192_v11  ;;  %v1671_v29 = vpop.permute.xlu1 %1670 }
 0x1b9   : > { %2033 = vmatprep.subr.mxu0 %v2192_v11  ;;  %v1677_v33 = vsel %vm1674_vm10, %v1671_v29, %v1673_v30  ;;  %v1676_v41 = vsel %vm1674_vm10, %v1669_v21, %v1671_v29 }
 0x1bb   : > { %1940 = vmatmul.mubr.msk.f32.vlgmr.msra.gmra.mrb[0].mxu1 %vm251_vm2, %v657_v7  ;;  %2031 = vmatmul.mubr.msk.f32.vlgmr.msra.gmra.mrb[10].mxu0 %vm251_vm2, %v993_v16 }
 0x1bc   : > { %1945 = vmatpush1.msk.msra.mxu1 %vm231_vm0, %v835_v19  ;;  %2034 = vmatpush3.msk.msra.mxu0 %vm231_vm0, %v1173_v15  ;;  %v1667_v42 = vpop.permute.xlu1 %1666 }
 0x1bd   : > { %1950 = vmatprep.subr.msk.mxu1 %vm231_vm0, %v1004_v17  ;;  %2035 = vmatprep.mubr.msk.f32.mxu0 %vm2193_vm1, %v2192_v11  ;;  %v1675_v43 = vsel %vm1674_vm10, %v1667_v42, %v1669_v21 }
 0x1be   : > { %2038 = vmatprep.subr.mxu0 %v2192_v11  ;;  %911 = vmatprep.mubr.f32.mxu1 %v2192_v11 }
 0x1bf   : > { %2036 = vmatmul.mubr.msk.f32.vlgmr.msra.gmra.mrb[12].mxu0 %vm251_vm2, %v1161_v23 }
 0x1c0   : > { %2039 = vmatpush3.msk.msra.mxu0 %vm231_vm0, %v1341_v22  ;;  %2040 = vmatprep.mubr.msk.f32.mxu0 %vm2193_vm1, %v2192_v11 }
 0x1c1   : > { %2043 = vmatprep.subr.mxu0 %v2192_v11 }
 0x1c3   : > { %1946 = vmatmul.mubr.msk.f32.vlgmr.msra.gmra.mrb[0].mxu1 %vm251_vm2, %v825_v10  ;;  %2041 = vmatmul.mubr.msk.f32.vlgmr.msra.gmra.mrb[14].mxu0 %vm251_vm2, %v1329_v25 }
 0x1c4   : > { %1951 = vmatpush1.msk.msra.mxu1 %vm231_vm0, %v1003_v31  ;;  %2044 = vmatpush3.msk.msra.mxu0 %vm231_vm0, %v1509_v26 }
 0x1c5   : > { %1956 = vmatprep.subr.msk.mxu1 %vm231_vm0, %v1172_v27  ;;  %2045 = vmatprep.mubr.msk.f32.mxu0 %vm2193_vm1, %v2192_v11 }
 0x1c6   : > { %2048 = vmatprep.subr.mxu0 %v2192_v11  ;;  %1079 = vmatprep.mubr.f32.mxu1 %v2192_v11 }
 0x1c7   : > { %2046 = vmatmul.mubr.msk.f32.vlgmr.msra.gmra.mrb[16].mxu0 %vm251_vm2, %v1497_v32 }
 0x1c8   : > { %2049 = vmatpush3.msk.msra.mxu0 %vm231_vm0, %v1677_v33  ;;  %2050 = vmatprep.mubr.msk.f32.mxu0 %vm2193_vm1, %v2192_v11 }
 0x1cb   : > { %1952 = vmatmul.mubr.msk.f32.vlgmr.msra.gmra.mrb[0].mxu1 %vm251_vm2, %v993_v16  ;;  %2051 = vmatmul.mubr.msk.f32.vlgmr.msra.gmra.mrb[18].mxu0 %vm251_vm2, %v1665_v35 }
 0x1cc   : > { %1957 = vmatpush1.msk.msra.mxu1 %vm231_vm0, %v1171_v37  ;;  %1247 = vmatprep.mubr.f32.mxu1 %v2192_v11 }
 0x1cd   : > { %1962 = vmatprep.subr.msk.mxu1 %vm231_vm0, %v1340_v36 }
 0x1d3   : > { %1958 = vmatmul.mubr.msk.f32.vlgmr.msra.gmra.mrb[0].mxu1 %vm251_vm2, %v1161_v23 }
 0x1d4   : > { %1963 = vmatpush1.msk.msra.mxu1 %vm231_vm0, %v1339_v38  ;;  %1415 = vmatprep.mubr.f32.mxu1 %v2192_v11 }
 0x1d5   : > { %1968 = vmatprep.subr.msk.mxu1 %vm231_vm0, %v1508_v39 }
 0x1db   : > { %1964 = vmatmul.mubr.msk.f32.vlgmr.msra.gmra.mrb[0].mxu1 %vm251_vm2, %v1329_v25 }
 0x1dc   : > { %1969 = vmatpush1.msk.msra.mxu1 %vm231_vm0, %v1507_v40  ;;  %1583 = vmatprep.mubr.f32.mxu1 %v2192_v11 }
 0x1dd   : > { %1974 = vmatprep.subr.msk.mxu1 %vm231_vm0, %v1676_v41 }
 0x1e3   : > { %1970 = vmatmul.mubr.msk.f32.vlgmr.msra.gmra.mrb[0].mxu1 %vm251_vm2, %v1497_v32 }
 0x1e4   : > { %1975 = vmatpush1.msk.msra.mxu1 %vm231_vm0, %v1675_v43  ;;  %1751 = vmatprep.mubr.f32.mxu1 %v2192_v11 }
 0x1eb   : > { %1976 = vmatmul.mubr.msk.f32.vlgmr.msra.gmra.mrb[0].mxu1 %vm251_vm2, %v1665_v35 }
 0x27e   : > { %v501_v44 = vpop.f32.mrb[2].mxu0 }
 0x27f   : > { %v2012_v45 = vpop.f32.mrb[3].mxu0 }
 0x282   : > { %v651_v46 = vpop.f32.mrb[4].mxu0 }
 0x283   : > { %v652_v47 = vadd.f32 %v651_v46, %v501_v44  ;;  %v2017_v48 = vpop.f32.mrb[5].mxu0 }
 0x286   : > { %v816_v49 = vpop.f32.mrb[6].mxu0 }
 0x287   : > { %v822_v50 = vadd.f32 %v816_v49, %v652_v47  ;;  %v2022_v51 = vpop.f32.mrb[7].mxu0 }
 0x28a   : > { %v984_v52 = vpop.f32.mrb[8].mxu0 }
 0x28b   : > { %v990_v53 = vadd.f32 %v984_v52, %v822_v50  ;;  %v2027_v54 = vpop.f32.mrb[9].mxu0 }
 0x28e   : > { %v1152_v55 = vpop.f32.mrb[10].mxu0 }
 0x28f   : > { %v1158_v56 = vadd.f32 %v1152_v55, %v990_v53  ;;  %v2032_v57 = vpop.f32.mrb[11].mxu0 }
 0x292   : > { %v1320_v58 = vpop.f32.mrb[12].mxu0 }
 0x293   : > { %v1326_v59 = vadd.f32 %v1320_v58, %v1158_v56  ;;  %v2037_v11 = vpop.f32.mrb[13].mxu0 }
 0x296   : > { %v1488_v60 = vpop.f32.mrb[14].mxu0 }
 0x297   : > { %v1494_v61 = vadd.f32 %v1488_v60, %v1326_v59  ;;  %v2042_v62 = vpop.f32.mrb[15].mxu0 }
 0x29a   : > { %v1656_v63 = vpop.f32.mrb[16].mxu0 }
 0x29b   : > { %v1662_v2 = vadd.f32 %v1656_v63, %v1494_v61  ;;  %v2047_v3 = vpop.f32.mrb[17].mxu0 }
 0x29e   : > { %v1824_v4 = vpop.f32.mrb[18].mxu0 }
 0x29f   : > { %v1830_v1 = vadd.f32 %v1824_v4, %v1662_v2  ;;  %v2052_v5 = vpop.f32.mrb[19].mxu0 }
 0x2a1   : > { %v1839_v6 = vadd.f32 %v1835_v0, %v1830_v1 }
 0x2a3   : > { %1842 = vst [vmem:[%s217_s12 + $0x10] sm:$0xff] %v1839_v6 }
 0x2be   : > { %v1753_v7 = vpop.f32.mrb[0].mxu1 }
 0x2bf   : > { %v1837_v8 = vadd.f32 %v1835_v0, %v1753_v7  ;;  %v1755_v9 = vpop.f32.mrb[1].mxu1 }
 0x2c0   : > { %v1838_v10 = vadd.f32 %v1835_v0, %v1755_v9 }
 0x2c1   : > { %1840 = vst [vmem:[%s217_s12] sm:$0xff] %v1837_v8 }
 0x2c2   : > { %1841 = vst [vmem:[%s217_s12 + $0x8] sm:$0xff] %v1838_v10 }
 0x2c3   : > { %2141 = shalt.err (!%p2138_p3)
}
 0x2c4   : > { %s2142_s6 = scalar_lea.hbm %s2541_s17, 384  ;;  %s2146_s9 = scalar_lea.hbm %s2588_s5, 768 }
 0x2c5   : > { %p2143_p4 = scmp.ne.s32.totalorder %s2541_s17, %s2142_s6  ;;  %p2147_p9 = scmp.lt.u32.totalorder %s2541_s17, %s2588_s5 }
 0x2c6   : > { %p2148_p10 = scmp.lt.u32.totalorder %s2146_s9, %s2142_s6  ;;  %p2150_p12 = scmp.lt.u32.totalorder %s2142_s6, %s2541_s17 }
 0x2c7   : > { %p2144_p7 = pnand %p2143_p4, %p2272_p5 }
 0x2c8   : > { %p2149_p11 = por %p2148_p10, %p2147_p9 }
 0x2c9   : > { %p2145_p8 = pneg %p2144_p7 }
 0x2ca   : > { %p2151_p13 = por %p2150_p12, %p2149_p11 }
 0x2cc   : > { %p2152_p0 = pnand %p2151_p13, %p2145_p8 }
 0x2ce   : > { %2155 = shalt.err (!%p2152_p0)
}
 0x2cf   : > { %2071 = dma.vmem_to_hbm [thread:$0]  (%p2272_p5), %s2543_s14, 384, %s2541_s17, %s1844_s23  }
 0x2d0 PF: > { %p2077_p1 = scmp.ge.s32.totalorder %s2190_s21, 2  ;;  %s1870_s12 = sand.u32 1, %s2178_s18  }
 0x2d1   : > { %s1871_s13 = scalar_lea.sflag [#allocation3], %s1870_s12 }
 0x2d2   : > { %p2074_p2 = pnand %p2077_p1, %p2276_p6 }
 0x2d4   : > { %2173 = dma.done.wait (!%p2074_p2), %s1871_s13, 384  }
 0x2d5   : > { %2175 = vsyncadd (!%p2074_p2), %s1871_s13, 4294966912  ;;  %p15_p3 = scmp.ge.s32.totalorder %s2259_s24, 4   ;;  %s2591_s18 = smov %s2182_s19 }
 0x2d6   : > { %s2592_s19 = smov %s2186_s20  ;;  %s2593_s20 = smov %s2270_s27 }
 0x2d7   : > { %s2594_s21 = smov %s2259_s24  ;;  %17 = sbr.rel (!%p15_p3) target bundleno = 3 (0x3), region = 83 }
 0x2de   :  { %1876 = vsyncpa [#allocation3], 1 }
 0x2df   :  { %1878 = vsyncpa [#allocation3 + $0x1], 1 }

</bundles_post_ra>
